<compile_context>
chip_gen: v7x
topology: tpu7x:2x2x1
jax: 0.10.0
libtpu: 0.0.40
codegen_flags: <defaults>
</compile_context>

<pallas_src>
import functools
import math

import numpy as np

import jax
import jax.numpy as jnp
from jax.experimental import pallas as pl
from jax.experimental.pallas import tpu as pltpu


_LANE = 128
_K_F32_TEMPS = 6          # live f32 intermediates per block (x, rolled copies, g, g2, scale)


def _cdiv(a: int, b: int) -> int:
    return (a + b - 1) // b


def _round_up(a: int, b: int) -> int:
    return _cdiv(a, b) * b


def _tpu_config():
    """Returns (physical VMEM bytes, device has >1 TensorCore)."""
    vmem = 64 * 1024 * 1024                       # conservative default (v7x per-TC VMEM)
    multi_tc = False
    try:
        info = pltpu.get_tpu_info()
        vmem = int(getattr(info, "vmem_capacity_bytes", vmem))
    except Exception:
        pass
    try:
        kind = jax.devices()[0].device_kind.lower()
        multi_tc = ("v7" in kind) or ("v4" in kind)   # 2 TCs/device; v5e/v6e have 1
    except Exception:
        pass
    return vmem, multi_tc


def _pick_tile(total_rows: int, granule: int, budget_rows: int, want_split: bool) -> int:
    """Rows per block along the tiled axis (multiple of `granule` unless one full block)."""
    budget = max(granule, (budget_rows // granule) * granule)
    if total_rows <= budget and not (want_split and total_rows > 2 * granule):
        return total_rows                          # one full-extent block
    tile = budget
    if want_split:                                 # guarantee >=2 blocks for 2 TensorCores
        tile = min(tile, _round_up(_cdiv(total_rows, 2), granule))
    return min(tile, _round_up(total_rows, granule))


def _roll(v, shift: int, axis: int):
    size = v.shape[axis]
    shift = shift % size
    if shift == 0:
        return v
    return pltpu.roll(v, shift, axis)


def _write_partial(out_ref, partial, accumulate: bool):
    val = jnp.broadcast_to(partial.astype(jnp.float32), out_ref.shape)
    if accumulate:
        # Single-TC chips: out block index is constant -> stays resident across the
        # grid ("arbitrary" axis); init once, accumulate, written back at the end.
        @pl.when(pl.program_id(0) == 0)
        def _():
            out_ref[...] = jnp.zeros_like(out_ref)
        out_ref[...] += val
    else:
        out_ref[...] = val


def _tal_flat_kernel(x_ref, code_ref, out_ref, *, total_valid, alpha, accumulate):
    """Lane-dense flat view.

    x_ref is a (rows, 128) window of the flattened [B*T] data (flat index = b*T + t).
    Blocks always start on a sequence boundary, so the torch.gradient stencil never
    needs a halo.  code_ref marks, per element, whether it is the first (1.0) / last
    (2.0) / interior (0.0) step of its sequence (host-precomputed, same every block).
    """
    x = x_ref[...].astype(jnp.float32)             # upcast right after the load
    rows, lanes = x.shape

    code = code_ref[...]
    is_first = code == 1.0
    is_last = code == 2.0
    scale = jnp.where(code == 0.0, jnp.float32(0.5), jnp.float32(1.0))

    r = jax.lax.broadcasted_iota(jnp.int32, x.shape, 0)
    l = jax.lax.broadcasted_iota(jnp.int32, x.shape, 1)
    flat = (pl.program_id(0) * rows + r) * lanes + l
    valid = flat < total_valid                     # host pad tail + padded last block
    x = jnp.where(valid, x, jnp.float32(0.0))

    first_lane = l == 0
    last_lane = l == lanes - 1

    def grad1(v):
        # flat +1 neighbour: lane roll; the lane-127 value is patched from the
        # sublane-rolled copy (= v[r+1, 0]); then clamped at sequence ends.
        nxt = _roll(v, lanes - 1, 1)
        nxt = jnp.where(last_lane, _roll(nxt, rows - 1, 0), nxt)
        # flat -1 neighbour: symmetric (lane-0 value patched with v[r-1, 127]).
        prv = _roll(v, 1, 1)
        prv = jnp.where(first_lane, _roll(prv, 1, 0), prv)
        nxt = jnp.where(is_last, v, nxt)           # one-sided diff at t = T-1
        prv = jnp.where(is_first, v, prv)          # one-sided diff at t = 0
        return (nxt - prv) * scale

    g = grad1(x)
    g2 = grad1(g)
    contrib = jnp.abs(g) + jnp.float32(alpha) * jnp.abs(g2)
    partial = jnp.sum(jnp.where(valid, contrib, jnp.float32(0.0)))
    _write_partial(out_ref, partial, accumulate)


def _tal_rows_kernel(x_ref, out_ref, *, total_rows, alpha, accumulate):
    """[B, T] layout: full T axis (lanes) in the block, batch rows tiled."""
    x = x_ref[...].astype(jnp.float32)
    rows, n = x.shape

    gidx = jax.lax.broadcasted_iota(jnp.int32, x.shape, 0) + pl.program_id(0) * rows
    row_valid = gidx < total_rows                  # mask padded rows of the last block
    x = jnp.where(row_valid, x, jnp.float32(0.0))

    pos = jax.lax.broadcasted_iota(jnp.int32, x.shape, 1)
    is_first = pos == 0
    is_last = pos == n - 1
    scale = jnp.where(is_first | is_last, jnp.float32(1.0), jnp.float32(0.5))

    def grad1(v):
        prv = jnp.where(is_first, v, _roll(v, 1, 1))        # v[i-1], clamped at i=0
        nxt = jnp.where(is_last, v, _roll(v, n - 1, 1))     # v[i+1], clamped at i=n-1
        return (nxt - prv) * scale

    g = grad1(x)
    g2 = grad1(g)
    # fully-zeroed padded rows contribute exactly zero, no extra contribution mask needed
    partial = jnp.sum(jnp.abs(g) + jnp.float32(alpha) * jnp.abs(g2))
    _write_partial(out_ref, partial, accumulate)


def temporal_alignment_loss(alignment_scores: jax.Array, alpha: float = 1.0,
                            *, block_bytes: int | None = None) -> jax.Array:
    """alignment_scores: [B, T, 1] (any float dtype).  Returns scalar f32 loss."""
    B, T, c = alignment_scores.shape
    assert c == 1, "alignment_scores must be [B, T, 1]"
    assert T >= 2, "torch.gradient needs at least 2 temporal steps"

    itemsize = jnp.dtype(alignment_scores.dtype).itemsize
    sub = 8 * max(1, 4 // itemsize)                # dtype-aware sublane granule (8/16/32)
    vmem_cap, multi_tc = _tpu_config()
    accumulate = not multi_tc                      # 1-TC chips: fold reduction into kernel
    if block_bytes is None:
        # per-buffer input block budget; larger on dual-TC chips to amortize the
        # ~0.35us/step overhead against their faster HBM.
        block_bytes = (4 if multi_tc else 2) * 1024 * 1024

    if T < _LANE:
        # ---------------- lane-dense flat path (small T) ----------------
        # Pure reshape when B*T is a multiple of 128 (no data movement); otherwise one
        # tiny fused pad+reshape -- still far cheaper than the old [T,B] transpose plus
        # a T/128-lane-dense kernel.
        total = B * T
        rows_total = _cdiv(total, _LANE)
        flat = jnp.reshape(alignment_scores, (total,))
        pad = rows_total * _LANE - total
        if pad:
            flat = jnp.pad(flat, (0, pad))
        x = jnp.reshape(flat, (rows_total, _LANE))

        q = T // math.gcd(T, _LANE)                # block rows must be a multiple of q so
        granule = math.lcm(q, sub)                 # every block starts at a sequence start
        budget_rows = max(1, block_bytes // (_LANE * itemsize))
        tile_rows = _pick_tile(rows_total, granule, budget_rows, multi_tc)
        n_blocks = _cdiv(rows_total, tile_rows)

        # first/last-step code, identical for every block (block start % T == 0)
        off = np.arange(tile_rows * _LANE, dtype=np.int64) % T
        code_np = np.where(off == 0, 1.0, np.where(off == T - 1, 2.0, 0.0))
        code = jnp.asarray(code_np.reshape(tile_rows, _LANE), dtype=jnp.float32)

        kernel = functools.partial(_tal_flat_kernel, total_valid=total,
                                   alpha=float(alpha), accumulate=accumulate)
        in_specs = [pl.BlockSpec((tile_rows, _LANE), lambda i: (i, 0)),
                    pl.BlockSpec((tile_rows, _LANE), lambda i: (0, 0))]
        operands = (x, code)
        block_elems = tile_rows * _LANE
        extra_in_bytes = 2 * block_elems * 4       # double-buffered f32 code block
    else:
        # ---------------- T-on-lanes path (T >= 128): tile batch rows ----------------
        # TODO(synk): for T so large that a single (granule, T) block exceeds the byte
        # budget, the T axis would also need tiling with a 2-column halo.
        x = jnp.reshape(alignment_scores, (B, T))  # dropping the size-1 dim is free
        t_pad = _round_up(T, _LANE)                # VMEM lane padding for budgeting
        budget_rows = max(1, block_bytes // (t_pad * itemsize))
        tile_rows = _pick_tile(B, sub, budget_rows, multi_tc)
        n_blocks = _cdiv(B, tile_rows)

        kernel = functools.partial(_tal_rows_kernel, total_rows=B,
                                   alpha=float(alpha), accumulate=accumulate)
        in_specs = [pl.BlockSpec((tile_rows, T), lambda i: (i, 0))]
        operands = (x,)
        block_elems = tile_rows * t_pad
        extra_in_bytes = 0

    if accumulate:
        n_out, out_map, semantics = 1, (lambda i: (0, 0, 0)), ("arbitrary",)
    else:
        n_out, out_map, semantics = n_blocks, (lambda i: (i, 0, 0)), ("parallel",)

    # double-buffered input block + f32 intermediates + constant code block + headroom
    est_vmem = (2 * block_elems * itemsize + _K_F32_TEMPS * block_elems * 4
                + extra_in_bytes + (256 << 10))
    vmem_limit = int(min(max(est_vmem, 8 << 20), vmem_cap * 3 // 4))

    out = pl.pallas_call(
        kernel,
        out_shape=jax.ShapeDtypeStruct((n_out, 1, _LANE), jnp.float32),
        grid=(n_blocks,),
        in_specs=in_specs,
        out_specs=pl.BlockSpec((1, 1, _LANE), out_map),
        compiler_params=pltpu.CompilerParams(
            dimension_semantics=semantics,
            vmem_limit_bytes=vmem_limit),
    )(*operands)

    return jnp.sum(out[:, 0, 0]) / jnp.float32(B * T)


def _reference_loss(alignment_scores: jax.Array, alpha: float = 1.0) -> jax.Array:
    # Pure-JAX reference (jnp.gradient matches torch.gradient semantics).
    x = jnp.squeeze(alignment_scores, axis=-1).astype(jnp.float32)
    g = jnp.gradient(x, axis=1)
    g2 = jnp.gradient(g, axis=1)
    return jnp.mean(jnp.abs(g)) + alpha * jnp.mean(jnp.abs(g2))


if __name__ == "__main__":
    alpha = 0.5
    keys = jax.random.split(jax.random.PRNGKey(0), 6)

    cases = [
        # (shape, dtype, block_bytes override)
        ((2, 8, 1), jnp.float32, None),       # module's stated small shape (flat path)
        ((5, 6, 1), jnp.float32, None),       # T not a divisor of 128 + tail padding
        ((16, 16, 1), jnp.bfloat16, None),    # bf16 input, dtype-aware granules
        ((128, 16, 1), jnp.float32, 4096),    # flat path, multiple blocks (cross-block)
        ((20, 128, 1), jnp.float32, 4096),    # T-on-lanes path, padded last batch block
        ((4, 256, 1), jnp.float32, None),     # T-on-lanes path, single block
    ]
    for i, (shape, dtype, bb) in enumerate(cases):
        scores = jax.random.normal(keys[i], shape, dtype=jnp.float32).astype(dtype)
        got = jax.block_until_ready(
            temporal_alignment_loss(scores, alpha=alpha, block_bytes=bb))
        ref = jax.block_until_ready(_reference_loss(scores, alpha=alpha))
        if not jnp.allclose(got, ref, rtol=1e-4, atol=1e-5):
            raise AssertionError(f"case {i} {shape}: pallas={got} reference={ref}")
    print("KERNEL_OK")
</pallas_src>

<mosaic_0001>
module attributes {stable_mosaic.version = 11 : i64} {
  func.func @_tal_flat_kernel(%arg0: i32, %arg1: memref<1x128xf32, #tpu.memory_space<vmem>>, %arg2: memref<1x128xf32, #tpu.memory_space<vmem>>, %arg3: memref<1x1x128xf32, #tpu.memory_space<vmem>>) attributes {dimension_semantics = [#tpu.dimension_semantics<arbitrary>], iteration_bounds = array<i64: 1>, scalar_prefetch = 0 : i64, scratch_operands = 0 : i64, tpu.core_type = #tpu.core_type<tc>, window_params = [{transform_indices = @transform_0, window_bounds = array<i64: 1, 128>}, {pipeline_mode = #tpu.pipeline_mode<synchronous>, transform_indices = @transform_1, window_bounds = array<i64: 1, 128>}, {pipeline_mode = #tpu.pipeline_mode<synchronous>, transform_indices = @transform_2, window_bounds = array<i64: 1, 1, 128>}]} {
    %c0 = arith.constant 0 : index
    %c0_0 = arith.constant 0 : index
    %0 = vector.load %arg1[%c0, %c0_0] : memref<1x128xf32, #tpu.memory_space<vmem>>, vector<1x128xf32>
    %c0_1 = arith.constant 0 : index
    %c0_2 = arith.constant 0 : index
    %1 = vector.load %arg2[%c0_1, %c0_2] : memref<1x128xf32, #tpu.memory_space<vmem>>, vector<1x128xf32>
    %cst = arith.constant 1.000000e+00 : f32
    %2 = vector.broadcast %cst : f32 to vector<1x128xf32>
    %3 = arith.cmpf oeq, %1, %2 : vector<1x128xf32>
    %cst_3 = arith.constant 2.000000e+00 : f32
    %4 = vector.broadcast %cst_3 : f32 to vector<1x128xf32>
    %5 = arith.cmpf oeq, %1, %4 : vector<1x128xf32>
    %cst_4 = arith.constant 0.000000e+00 : f32
    %6 = vector.broadcast %cst_4 : f32 to vector<1x128xf32>
    %7 = arith.cmpf oeq, %1, %6 : vector<1x128xf32>
    %cst_5 = arith.constant 5.000000e-01 : f32
    %cst_6 = arith.constant 1.000000e+00 : f32
    %8 = vector.broadcast %cst_5 : f32 to vector<1x128xf32>
    %9 = vector.broadcast %cst_6 : f32 to vector<1x128xf32>
    %10 = arith.select %7, %8, %9 : vector<1x128xi1>, vector<1x128xf32>
    %11 = tpu.iota {dimensions = array<i32: 0>} : vector<1x128xi32>
    %12 = tpu.iota {dimensions = array<i32: 1>} : vector<1x128xi32>
    %c1_i32 = arith.constant 1 : i32
    %13 = arith.muli %arg0, %c1_i32 : i32
    %14 = vector.broadcast %13 : i32 to vector<1x128xi32>
    %15 = arith.addi %14, %11 : vector<1x128xi32>
    %c128_i32 = arith.constant 128 : i32
    %16 = vector.broadcast %c128_i32 : i32 to vector<1x128xi32>
    %17 = arith.muli %15, %16 : vector<1x128xi32>
    %18 = arith.addi %17, %12 : vector<1x128xi32>
    %c16_i32 = arith.constant 16 : i32
    %19 = vector.broadcast %c16_i32 : i32 to vector<1x128xi32>
    %20 = arith.cmpi slt, %18, %19 : vector<1x128xi32>
    %cst_7 = arith.constant 0.000000e+00 : f32
    %21 = vector.broadcast %cst_7 : f32 to vector<1x128xf32>
    %22 = arith.select %20, %0, %21 : vector<1x128xi1>, vector<1x128xf32>
    %c0_i32 = arith.constant 0 : i32
    %23 = vector.broadcast %c0_i32 : i32 to vector<1x128xi32>
    %24 = arith.cmpi eq, %12, %23 : vector<1x128xi32>
    %c127_i32 = arith.constant 127 : i32
    %25 = vector.broadcast %c127_i32 : i32 to vector<1x128xi32>
    %26 = arith.cmpi eq, %12, %25 : vector<1x128xi32>
    %c127_i32_8 = arith.constant 127 : i32
    %27 = tpu.dynamic_rotate %22 by %c127_i32_8 dim 1 : vector<1x128xf32>, i32 -> vector<1x128xf32>
    %28 = arith.select %26, %27, %27 : vector<1x128xi1>, vector<1x128xf32>
    %c1_i32_9 = arith.constant 1 : i32
    %29 = tpu.dynamic_rotate %22 by %c1_i32_9 dim 1 : vector<1x128xf32>, i32 -> vector<1x128xf32>
    %30 = arith.select %24, %29, %29 : vector<1x128xi1>, vector<1x128xf32>
    %31 = arith.select %5, %22, %28 : vector<1x128xi1>, vector<1x128xf32>
    %32 = arith.select %3, %22, %30 : vector<1x128xi1>, vector<1x128xf32>
    %33 = arith.subf %31, %32 : vector<1x128xf32>
    %34 = arith.mulf %33, %10 : vector<1x128xf32>
    %c127_i32_10 = arith.constant 127 : i32
    %35 = tpu.dynamic_rotate %34 by %c127_i32_10 dim 1 : vector<1x128xf32>, i32 -> vector<1x128xf32>
    %36 = arith.select %26, %35, %35 : vector<1x128xi1>, vector<1x128xf32>
    %c1_i32_11 = arith.constant 1 : i32
    %37 = tpu.dynamic_rotate %34 by %c1_i32_11 dim 1 : vector<1x128xf32>, i32 -> vector<1x128xf32>
    %38 = arith.select %24, %37, %37 : vector<1x128xi1>, vector<1x128xf32>
    %39 = arith.select %5, %34, %36 : vector<1x128xi1>, vector<1x128xf32>
    %40 = arith.select %3, %34, %38 : vector<1x128xi1>, vector<1x128xf32>
    %41 = arith.subf %39, %40 : vector<1x128xf32>
    %42 = arith.mulf %41, %10 : vector<1x128xf32>
    %43 = math.absf %34 : vector<1x128xf32>
    %44 = math.absf %42 : vector<1x128xf32>
    %cst_12 = arith.constant 5.000000e-01 : f32
    %45 = vector.broadcast %cst_12 : f32 to vector<1x128xf32>
    %46 = arith.mulf %45, %44 : vector<1x128xf32>
    %47 = arith.addf %43, %46 : vector<1x128xf32>
    %cst_13 = arith.constant 0.000000e+00 : f32
    %48 = vector.broadcast %cst_13 : f32 to vector<1x128xf32>
    %49 = arith.select %20, %47, %48 : vector<1x128xi1>, vector<1x128xf32>
    %50 = vector.shape_cast %49 : vector<1x128xf32> to vector<1x1x128xf32>
    %cst_14 = arith.constant dense<0.000000e+00> : vector<1xf32>
    %51 = vector.multi_reduction <add>, %50, %cst_14 [1, 2] : vector<1x1x128xf32> to vector<1xf32>
    %52 = vector.shape_cast %51 : vector<1xf32> to vector<1x1x1xf32>
    %53 = vector.extract %52[0, 0, 0] : f32 from vector<1x1x1xf32>
    %54 = vector.broadcast %53 : f32 to vector<1x1x128xf32>
    %c0_i32_15 = arith.constant 0 : i32
    %55 = arith.cmpi eq, %arg0, %c0_i32_15 : i32
    %56 = arith.extui %55 : i1 to i32
    %c0_i32_16 = arith.constant 0 : i32
    %57 = arith.cmpi ne, %56, %c0_i32_16 : i32
    scf.if %57 {
      %cst_23 = arith.constant 0.000000e+00 : f32
      %61 = vector.broadcast %cst_23 : f32 to vector<1x1x128xf32>
      %c0_24 = arith.constant 0 : index
      %c0_25 = arith.constant 0 : index
      %c0_26 = arith.constant 0 : index
      %62 = vector.load %arg3[%c0_24, %c0_25, %c0_26] : memref<1x1x128xf32, #tpu.memory_space<vmem>>, vector<1x1x128xf32>
      tpu.vector_store %arg3[%c0_24, %c0_25, %c0_26], %61 {strides = array<i32>} : memref<1x1x128xf32, #tpu.memory_space<vmem>>, vector<1x1x128xf32>,
    } else {
    }
    %c0_17 = arith.constant 0 : index
    %c0_18 = arith.constant 0 : index
    %c0_19 = arith.constant 0 : index
    %58 = vector.load %arg3[%c0_17, %c0_18, %c0_19] : memref<1x1x128xf32, #tpu.memory_space<vmem>>, vector<1x1x128xf32>
    %59 = arith.addf %58, %54 : vector<1x1x128xf32>
    %c0_20 = arith.constant 0 : index
    %c0_21 = arith.constant 0 : index
    %c0_22 = arith.constant 0 : index
    %60 = vector.load %arg3[%c0_20, %c0_21, %c0_22] : memref<1x1x128xf32, #tpu.memory_space<vmem>>, vector<1x1x128xf32>
    tpu.vector_store %arg3[%c0_20, %c0_21, %c0_22], %59 {strides = array<i32>} : memref<1x1x128xf32, #tpu.memory_space<vmem>>, vector<1x1x128xf32>,
    return
  }
  func.func @transform_0(%arg0: i32) -> (i32, i32) {
    %c0_i32 = arith.constant 0 : i32
    %c0_i32_0 = arith.constant 0 : i32
    return %arg0, %c0_i32 : i32, i32
  }
  func.func @transform_1(%arg0: i32) -> (i32, i32) {
    %c0_i32 = arith.constant 0 : i32
    %c0_i32_0 = arith.constant 0 : i32
    %c0_i32_1 = arith.constant 0 : i32
    return %c0_i32, %c0_i32_0 : i32, i32
  }
  func.func @transform_2(%arg0: i32) -> (i32, i32, i32) {
    %c0_i32 = arith.constant 0 : i32
    %c0_i32_0 = arith.constant 0 : i32
    %c0_i32_1 = arith.constant 0 : i32
    %c0_i32_2 = arith.constant 0 : i32
    return %c0_i32, %c0_i32_0, %c0_i32_1 : i32, i32, i32
  }
}

</mosaic_0001>

<bundles_post_ra>
// kernel: tpu_custom_call.1
= control target key start
LH: loop header
LB: loop body
LE: loop exit
PB: predicated region body
PF: predicated region fallthrough
CT: control target
= control target key end

     0   :  { %7 = vsyncpa [#allocation3], 0  ;;  %s202_s0 = inlined_call_operand.hbm [shape: f32[1,128], index: 0, kind: input, shape index: {}]   ;;  %s203_s1 = inlined_call_operand.vmem [shape: f32[1,128], index: 1, kind: input, shape index: {}]   ;;  %s204_s2 = inlined_call_operand.hbm [shape: f32[1,1,128], index: 2, kind: output, shape index: {}]  }
   0x1   :  { %8 = vsyncpa [#allocation4], 0  ;;  %s152_s9 = smov [#allocation2]   ;;  %s104_s13 = scalar_lea.hbm %s202_s0, 16 }
   0x2   :  { %s15_s10 = sshll.u32 %s152_s9, 4  ;;  %p105_p0 = scmp.ne.s32.totalorder %s202_s0, %s104_s13  ;;  %s16_s10 = int_to_ptr.vmem [resolvable:$true] %s15_s10 }
   0x3   :  { %p108_p1 = scmp.lt.u32.totalorder %s104_s13, %s202_s0 }
   0x5   :  { %p110_p2 = pnand %p108_p1, %p105_p0 }
   0x7   :  { %113 = shalt.err (!%p110_p2)
}
   0x8   :  { %s114_s18 = scalar_lea.vmem %s16_s10, 16  ;;  %s118_s19 = scalar_lea.vmem %s16_s10, 32 }
   0x9   :  { %p115_p3 = scmp.ne.s32.totalorder %s16_s10, %s114_s18  ;;  %p119_p4 = scmp.lt.s32.totalorder %s16_s10, %s16_s10 }
   0xa   :  { %p120_p5 = scmp.lt.s32.totalorder %s118_s19, %s114_s18 }
   0xc   :  { %p121_p6 = por %p120_p5, %p119_p4 }
   0xe   :  { %p122_p7 = pnand %p121_p6, %p115_p3 }
  0x10   :  { %125 = shalt.err (!%p122_p7)
}
  0x11   :  { %18 = dma.hbm_to_vmem [thread:$0]  %s202_s0, 16, %s16_s10, [#allocation3]  }
  0x12   :  { %148 = dma.done.wait [#allocation3], 16  }
  0x13   :  { %149 = vsyncadd [#allocation3], 4294967280  ;;  %v30_v0 = vlaneseq  ;;  %v153_v1 = vmov 0.0   ;;  %v24_v6 = vld [vmem:[#allocation2] sm:$0x1]  ;;  %s154_s22 = smov 127  }
  0x14   :  { %77 = vst [vmem:[#allocation5] sm:$0x1] %v153_v1  ;;  %s155_s23 = smov 1   ;;  %v25_v8 = vld [vmem:[%s203_s1] sm:$0x1]  ;;  %v156_v12 = vmov 1.0  }
  0x15   :  { %v31_v2 = vshrl.u32 %v30_v0, 7  ;;  %v33_v3 = vand.u32 127, %v30_v0  ;;  %vm27_vm1 = vcmp.eq.f32.partialorder %v25_v8, 2.0  ;;  %vm26_vm2 = vcmp.eq.f32.partialorder %v25_v8, 1.0  ;;  %s157_s0 = smov [#allocation5]  }
  0x16   :  { %vm28_vm3 = vcmp.eq.f32.partialorder %v25_v8, 0.0  ;;  %vm61_vm4 = vcmask 1040384   ;;  %s87_s1 = sshll.u32 %s157_s0, 4  ;;  %s88_s1 = int_to_ptr.vmem [resolvable:$true] %s87_s1 }
  0x17   :  { %v36_v4 = vmul.u32 128, %v31_v2  ;;  %v29_v13 = vsel %vm28_vm3, 0.5, %v156_v12  ;;  %s126_s27 = scalar_lea.vmem %s88_s1, 16  ;;  %s130_s28 = scalar_lea.vmem %s88_s1, 32 }
  0x18   :  { %p127_p8 = scmp.ne.s32.totalorder %s88_s1, %s126_s27  ;;  %p131_p9 = scmp.lt.s32.totalorder %s88_s1, %s88_s1 }
  0x19   :  { %v37_v5 = vadd.s32 %v36_v4, %v33_v3  ;;  %p132_p10 = scmp.lt.s32.totalorder %s130_s28, %s126_s27 }
  0x1b   :  { %vm38_vm0 = vcmp.lt.s32.totalorder %v37_v5, 16  ;;  %v78_v36 = vld [vmem:[#allocation5] sm:$0x1]  ;;  %p133_p11 = por %p132_p10, %p131_p9 }
  0x1c   :  { %v39_v7 = vsel %vm38_vm0, %v24_v6, 0.0 }
  0x1d   :  { %40 = vrot.lane.b32.xlu0 %v39_v7, %s154_s22  ;;  %p134_p12 = pnand %p133_p11, %p127_p8 }
  0x21   :  { %42 = vrot.lane.b32.xlu0 %v39_v7, %s155_s23 }
  0x8f   :  { %v41_v9 = vpop.permute.xlu0 %40 }
  0x90   :  { %v44_v11 = vsel %vm27_vm1, %v39_v7, %v41_v9 }
  0x93   :  { %v43_v10 = vpop.permute.xlu0 %42 }
  0x94   :  { %v45_v14 = vsel %vm26_vm2, %v39_v7, %v43_v10 }
  0x95   :  { %v46_v15 = vsub.f32 %v44_v11, %v45_v14 }
  0x97   :  { %v47_v16 = vmul.f32 %v46_v15, %v29_v13 }
  0x99   :  { %48 = vrot.lane.b32.xlu1 %v47_v16, %s154_s22  ;;  %v56_v24 = vand.u32 2147483647, %v47_v16 }
  0x9d   :  { %50 = vrot.lane.b32.xlu1 %v47_v16, %s155_s23 }
 0x10b   :  { %v49_v17 = vpop.permute.xlu1 %48 }
 0x10c   :  { %v52_v19 = vsel %vm27_vm1, %v47_v16, %v49_v17 }
 0x10f   :  { %v51_v18 = vpop.permute.xlu1 %50 }
 0x110   :  { %v53_v20 = vsel %vm26_vm2, %v47_v16, %v51_v18 }
 0x111   :  { %v54_v21 = vsub.f32 %v52_v19, %v53_v20 }
 0x113   :  { %v55_v22 = vmul.f32 %v54_v21, %v29_v13 }
 0x115   :  { %v57_v23 = vand.u32 2147483647, %v55_v22 }
 0x117   :  { %v58_v25 = vmul.f32 0.5, %v57_v23 }
 0x119   :  { %v59_v26 = vadd.f32 %v58_v25, %v56_v24 }
 0x11b   :  { %v60_v27 = vsel %vm38_vm0, %v59_v26, 0.0 }
 0x11c   :  { %v62_v28 = vsel %vm61_vm4, %v60_v27, 0.0 }
 0x11d   :  { %63 = vadd.xlane.f32.xlu0 %v62_v28 }
 0x1aa   :  { %v64_v29 = vpop.xlane.xlu0 %63 }
 0x1ab   :  { %v65_v30 = vrot.slane %v64_v29, 4 }
 0x1ad   :  { %v66_v31 = vadd.f32 %v65_v30, %v64_v29 }
 0x1af   :  { %v67_v32 = vrot.slane %v66_v31, 2 }
 0x1b1   :  { %v68_v33 = vadd.f32 %v67_v32, %v66_v31 }
 0x1b3   :  { %v69_v34 = vrot.slane %v68_v33, 1 }
 0x1b5   :  { %v70_v35 = vadd.f32 %v69_v34, %v68_v33 }
 0x1b7   :  { %96 = vpush %v70_v35 }
 0x1e8   :  { %s97_s26 = spop %96 }
 0x1e9   :  { %v72_v37 = vstv %s97_s26 }
 0x1ea   :  { %v79_v38 = vadd.f32 %v78_v36, %v72_v37 }
 0x1ec   :  { %80 = vst [vmem:[#allocation5] sm:$0x1] %v79_v38 }
 0x1ed   :  { %137 = shalt.err (!%p134_p12)
}
 0x1ee   :  { %s138_s3 = scalar_lea.hbm %s204_s2, 16 }
 0x1ef   :  { %p139_p13 = scmp.ne.s32.totalorder %s204_s2, %s138_s3  ;;  %p142_p0 = scmp.lt.u32.totalorder %s138_s3, %s204_s2 }
 0x1f1   :  { %p144_p1 = pnand %p142_p0, %p139_p13 }
 0x1f3   :  { %147 = shalt.err (!%p144_p1)
}
 0x1f4   :  { %90 = dma.vmem_to_hbm [thread:$0]  %s88_s1, 16, %s204_s2, [#allocation4]  }
 0x1f5   :  { %150 = dma.done.wait [#allocation4], 16  }
 0x1f6   :  { %151 = vsyncadd [#allocation4], 4294967280 }
 0x1f7   :  { %94 = vsyncpa [#allocation3], 1 }
 0x1f8   :  { %95 = vsyncpa [#allocation4], 1 }

</bundles_post_ra>
